<compile_context>
chip_gen: v6e
topology: v6e:2x2x1
jax: 0.10.0
libtpu: 0.0.40
codegen_flags: <defaults>
</compile_context>

<pallas_src>
import functools

import jax
import jax.numpy as jnp
from jax.experimental import pallas as pl
from jax.experimental.pallas import tpu as pltpu


def _rope_kernel(pos_ref, inv_freq_ref, p_ref, q_ref, k_ref, qo_ref, ko_ref):
    # pos_ref:      (TR, 1) f32  sequence position of every (folded) row
    # inv_freq_ref: (1, L)  f32  [inv_freq, inv_freq] tiled across the folded lane dim
    # p_ref:        (L, L)  f32  block-diag signed permutation implementing rotate_half
    # q_ref/k_ref:  (TR, L) f32
    angles = pos_ref[...] * inv_freq_ref[...]          # (TR, L) via broadcast
    cos = jnp.cos(angles)
    sin = jnp.sin(angles)

    p = p_ref[...]
    q = q_ref[...]
    k = k_ref[...]

    # rotate_half as a signed lane permutation on the (otherwise idle) MXU: rot(x) = x @ P
    q_rh = jnp.dot(q, p, preferred_element_type=jnp.float32)
    k_rh = jnp.dot(k, p, preferred_element_type=jnp.float32)

    qo_ref[...] = (q * cos + q_rh * sin).astype(qo_ref.dtype)
    ko_ref[...] = (k * cos + k_rh * sin).astype(ko_ref.dtype)


def _make_rotate_half_matrix(dim):
    # rot(x)[j] = -x[2j+1]          for j <  dim//2
    # rot(x)[j] =  x[2*(j-dim//2)]  for j >= dim//2
    h = dim // 2
    j = jnp.arange(h)
    p = jnp.zeros((dim, dim), jnp.float32)
    p = p.at[2 * j + 1, j].set(-1.0)
    p = p.at[2 * j, j + h].set(1.0)
    return p


def _fold_factor(batch, d_model, lane_target=128):
    # Largest divisor g of batch such that g*d_model <= lane_target.  g rows are folded
    # into the lane dimension; g | batch guarantees a single position per folded row.
    g = 1
    for cand in range(1, batch + 1):
        if batch % cand == 0 and cand * d_model <= lane_target:
            g = cand
    return g


def _row_tile(rows, lane, target_elems=1 << 18, max_rows=2048):
    # ~1 MiB per (TR, lane) f32 operand block; 4 big arrays x 2 pipeline buffers + temps
    # keeps total VMEM use well under the explicit 32 MiB limit on all generations.
    tr = max(8, min(max_rows, target_elems // max(lane, 1)))
    tr = (tr // 8) * 8
    if tr >= rows:
        return rows              # full extent is always a legal block shape
    return max(8, tr)


@functools.partial(jax.jit, static_argnums=(2,))
def rotary_positional_embedding(q, k, dim):
    """q, k: (seq_len, batch, d_model) f32 with d_model == dim."""
    seq_len, batch, d_model = q.shape
    assert d_model == dim

    # Deterministic "parameter", as in the module's __init__.
    inv_freq = 1.0 / (10000.0 ** (jnp.arange(0, dim, 2, dtype=jnp.float32) / dim))
    inv_freq_full = jnp.concatenate([inv_freq, inv_freq]).reshape(1, dim)
    p_d = _make_rotate_half_matrix(dim)

    # Fold g consecutive rows into the lane dim when d_model < 128 so loads/stores and
    # the vector core run lane-dense.  g | batch => all folded rows share one position.
    g = _fold_factor(batch, d_model)
    lane = g * d_model
    rows = seq_len * batch
    rows_f = rows // g
    m = batch // g

    inv_freq_lane = jnp.tile(inv_freq_full, (1, g))                  # (1, lane)
    p_big = jnp.kron(jnp.eye(g, dtype=jnp.float32), p_d)             # (lane, lane)

    # Position of each folded row (row R -> seq index R // (batch//g)), computed here so
    # the kernel contains no integer division.
    pos_col = (jnp.arange(rows_f, dtype=jnp.int32) // m).astype(jnp.float32)
    pos_col = pos_col.reshape(rows_f, 1)

    # Pure reshapes (row-major contiguous), no data movement.
    q2 = q.reshape(rows_f, lane)
    k2 = k.reshape(rows_f, lane)

    tr = _row_tile(rows_f, lane)
    grid = (pl.cdiv(rows_f, tr),)

    row_map = lambda i: (i, 0)
    const_map = lambda i: (0, 0)

    out_shape = jax.ShapeDtypeStruct((rows_f, lane), q.dtype)

    qo, ko = pl.pallas_call(
        _rope_kernel,
        grid=grid,
        in_specs=[
            pl.BlockSpec((tr, 1), row_map),            # positions (tiny)
            pl.BlockSpec((1, lane), const_map),        # inv_freq (resident across grid)
            pl.BlockSpec((lane, lane), const_map),     # rotate_half permutation (resident)
            pl.BlockSpec((tr, lane), row_map),         # q tile
            pl.BlockSpec((tr, lane), row_map),         # k tile
        ],
        out_specs=(
            pl.BlockSpec((tr, lane), row_map),
            pl.BlockSpec((tr, lane), row_map),
        ),
        out_shape=(out_shape, out_shape),
        compiler_params=pltpu.CompilerParams(
            dimension_semantics=("parallel",),
            vmem_limit_bytes=32 * 1024 * 1024,
        ),
    )(pos_col, inv_freq_lane, p_big, q2, k2)

    return (qo.reshape(seq_len, batch, d_model),
            ko.reshape(seq_len, batch, d_model))


def _reference_rope(q, k, dim):
    seq_len, batch, d_model = q.shape
    inv_freq = 1.0 / (10000.0 ** (jnp.arange(0, dim, 2, dtype=jnp.float32) / dim))
    qp = jnp.transpose(q, (1, 0, 2))
    kp = jnp.transpose(k, (1, 0, 2))
    pos = jnp.arange(seq_len, dtype=jnp.float32)
    ang = pos[:, None] * inv_freq[None, :]
    ang = jnp.concatenate([ang, ang], axis=-1)
    cos, sin = jnp.cos(ang), jnp.sin(ang)

    def rot_half(x):
        x1, x2 = x[..., ::2], x[..., 1::2]
        return jnp.concatenate([-x2, x1], axis=-1)

    q_rot = qp * cos + rot_half(qp) * sin
    k_rot = kp * cos + rot_half(kp) * sin
    return jnp.transpose(q_rot, (1, 0, 2)), jnp.transpose(k_rot, (1, 0, 2))


if __name__ == "__main__":
    seq_len, batch, d_model = 8, 2, 32
    key = jax.random.PRNGKey(0)
    kq, kk = jax.random.split(key)
    q = jax.random.normal(kq, (seq_len, batch, d_model), dtype=jnp.float32)
    k = jax.random.normal(kk, (seq_len, batch, d_model), dtype=jnp.float32)

    q_rot, k_rot = rotary_positional_embedding(q, k, d_model)
    jax.block_until_ready((q_rot, k_rot))

    q_ref, k_ref = _reference_rope(q, k, d_model)
    assert jnp.allclose(q_rot, q_ref, atol=1e-5, rtol=1e-5)
    assert jnp.allclose(k_rot, k_ref, atol=1e-5, rtol=1e-5)

    print("KERNEL_OK")
</pallas_src>

<mosaic_0001>
module attributes {stable_mosaic.version = 11 : i64} {
  func.func @_rope_kernel(%arg0: i32, %arg1: memref<8x1xf32, #tpu.memory_space<vmem>>, %arg2: memref<1x64xf32, #tpu.memory_space<vmem>>, %arg3: memref<64x64xf32, #tpu.memory_space<vmem>>, %arg4: memref<8x64xf32, #tpu.memory_space<vmem>>, %arg5: memref<8x64xf32, #tpu.memory_space<vmem>>, %arg6: memref<8x64xf32, #tpu.memory_space<vmem>>, %arg7: memref<8x64xf32, #tpu.memory_space<vmem>>) attributes {dimension_semantics = [#tpu.dimension_semantics<parallel>], iteration_bounds = array<i64: 1>, scalar_prefetch = 0 : i64, scratch_operands = 0 : i64, tpu.core_type = #tpu.core_type<tc>, window_params = [{transform_indices = @transform_0, window_bounds = array<i64: 8, 1>}, {pipeline_mode = #tpu.pipeline_mode<synchronous>, transform_indices = @transform_1, window_bounds = array<i64: 1, 64>}, {pipeline_mode = #tpu.pipeline_mode<synchronous>, transform_indices = @transform_2, window_bounds = array<i64: 64, 64>}, {transform_indices = @transform_3, window_bounds = array<i64: 8, 64>}, {transform_indices = @transform_4, window_bounds = array<i64: 8, 64>}, {transform_indices = @transform_5, window_bounds = array<i64: 8, 64>}, {transform_indices = @transform_6, window_bounds = array<i64: 8, 64>}]} {
    %c0 = arith.constant 0 : index
    %c0_0 = arith.constant 0 : index
    %0 = vector.load %arg1[%c0, %c0_0] : memref<8x1xf32, #tpu.memory_space<vmem>>, vector<8x1xf32>
    %c0_1 = arith.constant 0 : index
    %c0_2 = arith.constant 0 : index
    %1 = vector.load %arg2[%c0_1, %c0_2] : memref<1x64xf32, #tpu.memory_space<vmem>>, vector<1x64xf32>
    %2 = vector.broadcast %0 : vector<8x1xf32> to vector<8x64xf32>
    %3 = vector.broadcast %1 : vector<1x64xf32> to vector<8x64xf32>
    %4 = arith.mulf %2, %3 : vector<8x64xf32>
    %5 = math.cos %4 : vector<8x64xf32>
    %6 = math.sin %4 : vector<8x64xf32>
    %c0_3 = arith.constant 0 : index
    %c0_4 = arith.constant 0 : index
    %7 = vector.load %arg3[%c0_3, %c0_4] : memref<64x64xf32, #tpu.memory_space<vmem>>, vector<64x64xf32>
    %c0_5 = arith.constant 0 : index
    %c0_6 = arith.constant 0 : index
    %8 = vector.load %arg4[%c0_5, %c0_6] : memref<8x64xf32, #tpu.memory_space<vmem>>, vector<8x64xf32>
    %c0_7 = arith.constant 0 : index
    %c0_8 = arith.constant 0 : index
    %9 = vector.load %arg5[%c0_7, %c0_8] : memref<8x64xf32, #tpu.memory_space<vmem>>, vector<8x64xf32>
    %cst = arith.constant dense<0.000000e+00> : vector<8x64xf32>
    %10 = tpu.matmul %8, %7, %cst {dimension_numbers = #tpu.dot_dimension_numbers<[1], [0], [0], [1], [0, 0, 1, 1], [], []>} : vector<8x64xf32>, vector<64x64xf32>, vector<8x64xf32> -> vector<8x64xf32>
    %cst_9 = arith.constant dense<0.000000e+00> : vector<8x64xf32>
    %11 = tpu.matmul %9, %7, %cst_9 {dimension_numbers = #tpu.dot_dimension_numbers<[1], [0], [0], [1], [0, 0, 1, 1], [], []>} : vector<8x64xf32>, vector<64x64xf32>, vector<8x64xf32> -> vector<8x64xf32>
    %12 = arith.mulf %8, %5 : vector<8x64xf32>
    %13 = arith.mulf %10, %6 : vector<8x64xf32>
    %14 = arith.addf %12, %13 : vector<8x64xf32>
    %c0_10 = arith.constant 0 : index
    %c0_11 = arith.constant 0 : index
    %15 = vector.load %arg6[%c0_10, %c0_11] : memref<8x64xf32, #tpu.memory_space<vmem>>, vector<8x64xf32>
    tpu.vector_store %arg6[%c0_10, %c0_11], %14 {strides = array<i32>} : memref<8x64xf32, #tpu.memory_space<vmem>>, vector<8x64xf32>,
    %16 = arith.mulf %9, %5 : vector<8x64xf32>
    %17 = arith.mulf %11, %6 : vector<8x64xf32>
    %18 = arith.addf %16, %17 : vector<8x64xf32>
    %c0_12 = arith.constant 0 : index
    %c0_13 = arith.constant 0 : index
    %19 = vector.load %arg7[%c0_12, %c0_13] : memref<8x64xf32, #tpu.memory_space<vmem>>, vector<8x64xf32>
    tpu.vector_store %arg7[%c0_12, %c0_13], %18 {strides = array<i32>} : memref<8x64xf32, #tpu.memory_space<vmem>>, vector<8x64xf32>,
    return
  }
  func.func @transform_0(%arg0: i32) -> (i32, i32) {
    %c0_i32 = arith.constant 0 : i32
    %c0_i32_0 = arith.constant 0 : i32
    return %arg0, %c0_i32 : i32, i32
  }
  func.func @transform_1(%arg0: i32) -> (i32, i32) {
    %c0_i32 = arith.constant 0 : i32
    %c0_i32_0 = arith.constant 0 : i32
    %c0_i32_1 = arith.constant 0 : i32
    return %c0_i32, %c0_i32_0 : i32, i32
  }
  func.func @transform_2(%arg0: i32) -> (i32, i32) {
    %c0_i32 = arith.constant 0 : i32
    %c0_i32_0 = arith.constant 0 : i32
    %c0_i32_1 = arith.constant 0 : i32
    return %c0_i32, %c0_i32_0 : i32, i32
  }
  func.func @transform_3(%arg0: i32) -> (i32, i32) {
    %c0_i32 = arith.constant 0 : i32
    %c0_i32_0 = arith.constant 0 : i32
    return %arg0, %c0_i32 : i32, i32
  }
  func.func @transform_4(%arg0: i32) -> (i32, i32) {
    %c0_i32 = arith.constant 0 : i32
    %c0_i32_0 = arith.constant 0 : i32
    return %arg0, %c0_i32 : i32, i32
  }
  func.func @transform_5(%arg0: i32) -> (i32, i32) {
    %c0_i32 = arith.constant 0 : i32
    %c0_i32_0 = arith.constant 0 : i32
    return %arg0, %c0_i32 : i32, i32
  }
  func.func @transform_6(%arg0: i32) -> (i32, i32) {
    %c0_i32 = arith.constant 0 : i32
    %c0_i32_0 = arith.constant 0 : i32
    return %arg0, %c0_i32 : i32, i32
  }
}

</mosaic_0001>

<bundles_post_ra>
// kernel: rotary_positional_embedding.1
= control target key start
LH: loop header
LB: loop body
LE: loop exit
PB: predicated region body
PF: predicated region fallthrough
CT: control target
= control target key end

     0   :  { %v501_v0 = vmov 0.0   ;;  %v502_v3 = vmov 0   ;;  %vm253_vm0 = vcmask 523264   ;;  %vm503_vm1 = vmmov 0   ;;  %s620_s2 = inlined_call_operand.vmem [shape: f32[64,64], index: 2, kind: input, shape index: {}]   ;;  %s621_s0 = inlined_call_operand.vmem [shape: f32[8,1], index: 0, kind: input, shape index: {}]   ;;  %s622_s3 = inlined_call_operand.vmem [shape: f32[8,64], index: 3, kind: input, shape index: {}]   ;;  %s623_s4 = inlined_call_operand.vmem [shape: f32[8,64], index: 4, kind: input, shape index: {}]   ;;  %s624_s1 = inlined_call_operand.vmem [shape: f32[1,64], index: 1, kind: input, shape index: {}]   ;;  %s625_s5 = inlined_call_operand.vmem [shape: f32[8,64], index: 5, kind: output, shape index: {0}]   ;;  %s626_s6 = inlined_call_operand.vmem [shape: f32[8,64], index: 6, kind: output, shape index: {1}]  }
   0x1   :  { %445 = vmatprep.subr.mxu0 %v501_v0  ;;  %464 = vmatprep.subr.mxu1 %v501_v0  ;;  %v250_v1 = vld [vmem:[%s620_s2 + $0x38] sm:$0xff]  ;;  %v22_v2 = vld [vmem:[%s621_s0] sm:$0xff]  ;;  %v249_v4 = vld [vmem:[%s620_s2 + $0x30] sm:$0xff]  ;;  %v504_v26 = vmov 683565275  }
   0x2   :  { %496 = vset.pattern.permute.xlu0 %v502_v3  ;;  %446 = vmatpush3.msra.mxu0 %v250_v1  ;;  %v248_v5 = vld [vmem:[%s620_s2 + $0x28] sm:$0xff]  ;;  %v247_v6 = vld [vmem:[%s620_s2 + $0x20] sm:$0xff]  ;;  %v246_v7 = vld [vmem:[%s620_s2 + $0x18] sm:$0xff]  ;;  %v505_v28 = vmov 2475754826  }
   0x3   :  { %465 = vmatpush3.msra.mxu1 %v250_v1  ;;  %26 = vperm.xlu0 %496, %v22_v2   ;;  %v245_v8 = vld [vmem:[%s620_s2 + $0x10] sm:$0xff]  ;;  %v244_v9 = vld [vmem:[%s620_s2 + $0x8] sm:$0xff]  ;;  %v243_v10 = vld [vmem:[%s620_s2] sm:$0xff]  ;;  %v506_v31 = vmov 2131351028  }
   0x4   :  { %447 = vmatprep.subr.mxu0 %v501_v0  ;;  %466 = vmatprep.subr.mxu1 %v501_v0  ;;  %v575_v11 = vld [vmem:[%s622_s3] sm:$0xff]  ;;  %v507_v34 = vmov 2102212464   ;;  %v508_v37 = vmov 920167782  }
   0x5   :  { %448 = vmatpush3.msra.mxu0 %v249_v4  ;;  %467 = vmatpush3.msra.mxu1 %v249_v4  ;;  %v580_v12 = vld [vmem:[%s623_s4] sm:$0xff]  ;;  %v509_v40 = vmov 1326507024  }
   0x6   :  { %449 = vmatprep.subr.mxu0 %v501_v0  ;;  %468 = vmatprep.subr.mxu1 %v501_v0  ;;  %v416_v13 = vld [vmem:[%s624_s1] ss:$0 sm:$0xff] }
   0x7   :  { %450 = vmatpush3.msra.mxu0 %v248_v5  ;;  %469 = vmatpush3.msra.mxu1 %v248_v5 }
   0x8   :  { %451 = vmatprep.subr.mxu0 %v501_v0  ;;  %470 = vmatprep.subr.mxu1 %v501_v0 }
   0x9   :  { %452 = vmatpush3.msra.mxu0 %v247_v6  ;;  %471 = vmatpush3.msra.mxu1 %v247_v6 }
   0xa   :  { %453 = vmatprep.subr.mxu0 %v501_v0  ;;  %472 = vmatprep.subr.mxu1 %v501_v0 }
   0xb   :  { %454 = vmatpush3.msra.mxu0 %v246_v7  ;;  %473 = vmatpush3.msra.mxu1 %v246_v7 }
   0xc   :  { %455 = vmatprep.subr.mxu0 %v501_v0  ;;  %474 = vmatprep.subr.mxu1 %v501_v0 }
   0xd   :  { %456 = vmatpush3.msra.mxu0 %v245_v8  ;;  %475 = vmatpush3.msra.mxu1 %v245_v8 }
   0xe   :  { %457 = vmatprep.subr.mxu0 %v501_v0  ;;  %476 = vmatprep.subr.mxu1 %v501_v0 }
   0xf   :  { %458 = vmatpush3.msra.mxu0 %v244_v9  ;;  %477 = vmatpush3.msra.mxu1 %v244_v9 }
  0x10   :  { %459 = vmatprep.subr.mxu0 %v501_v0  ;;  %478 = vmatprep.subr.mxu1 %v501_v0 }
  0x11   :  { %460 = vmatpush3.msra.mxu0 %v243_v10  ;;  %461 = vmatprep.mubr.msk.f32.mxu0 %vm503_vm1, %v501_v0 }
  0x12   :  { %479 = vmatpush3.msra.mxu1 %v243_v10  ;;  %480 = vmatprep.mubr.msk.f32.mxu1 %vm503_vm1, %v501_v0 }
  0x13   :  { %462 = vmatmul.mubr.msk.f32.vlgmr.msra.gmra.mxu0 %vm253_vm0, %v575_v11  ;;  %481 = vmatmul.mubr.msk.f32.vlgmr.msra.gmra.mxu1 %vm253_vm0, %v580_v12 }
  0x7e   :  { %v27_v14 = vpop.permute.xlu0 %26 }
  0x7f   :  { %v589_v15 = vmul.f32 %v416_v13, %v27_v14 }
  0x81   :  { %v39_v16 = vand.u32 2139095040, %v589_v15  ;;  %v36_v20 = vand.u32 2147483647, %v589_v15  ;;  %vm38_vm9 = vcmp.lt.s32.totalorder %v589_v15, 0 }
  0x83   :  { %v40_v17 = vshrl.u32 %v39_v16, 23  ;;  %v43_v23 = vand.u32 8388607, %v36_v20  ;;  %vm37_vm10 = vcmp.le.f32.partialorder %v36_v20, 0.7853982 }
  0x85   :  { %v417_v18 = vadd.s32 4294967169, %v40_v17  ;;  %v44_v42 = vor.u32 8388608, %v43_v23 }
  0x87   :  { %v46_v19 = vadd.s32 1, %v417_v18  ;;  %v84_v56 = vshll.u32 %v44_v42, 8 }
  0x89   :  { %vm47_vm2 = vcmp.gt.s32.totalorder %v46_v19, 0 }
  0x8a   :  { %v48_v21 = vsel %vm47_vm2, %v46_v19, 0  ;;  %vm128_vm2 = vweird.f32 %v589_v15 }
  0x8b   :  { %v50_v22 = vand.u32 31, %v48_v21  ;;  %v49_v25 = vshrl.u32 %v48_v21, 5 }
  0x8d   :  { %v51_v24 = vsub.s32 32, %v50_v22  ;;  %v53_v27 = vshll.u32 %v504_v26, %v50_v22  ;;  %v56_v29 = vshll.u32 %v505_v28, %v50_v22  ;;  %v59_v33 = vshll.u32 %v506_v31, %v50_v22 }
  0x8e   :  { %v62_v36 = vshll.u32 %v507_v34, %v50_v22  ;;  %v65_v39 = vshll.u32 %v508_v37, %v50_v22  ;;  %vm68_vm3 = vcmp.lt.s32.totalorder %v49_v25, 1  ;;  %vm71_vm4 = vcmp.lt.s32.totalorder %v49_v25, 4 }
  0x8f   :  { %v54_v30 = vshrl.u32 %v505_v28, %v51_v24  ;;  %v57_v32 = vshrl.u32 %v506_v31, %v51_v24  ;;  %v60_v35 = vshrl.u32 %v507_v34, %v51_v24  ;;  %v63_v38 = vshrl.u32 %v508_v37, %v51_v24 }
  0x90   :  { %v66_v41 = vshrl.u32 %v509_v40, %v51_v24  ;;  %v52_v51 = vshrl.u32 %v504_v26, %v51_v24  ;;  %vm70_vm5 = vcmp.lt.s32.totalorder %v49_v25, 3  ;;  %vm69_vm6 = vcmp.lt.s32.totalorder %v49_v25, 2 }
  0x91   :  { %v55_v43 = vor.u32 %v54_v30, %v53_v27  ;;  %v58_v44 = vor.u32 %v57_v32, %v56_v29  ;;  %v61_v45 = vor.u32 %v60_v35, %v59_v33  ;;  %v64_v46 = vor.u32 %v63_v38, %v62_v36 }
  0x92   :  { %v67_v47 = vor.u32 %v66_v41, %v65_v39 }
  0x93   :  { %v73_v48 = vsel %vm71_vm4, %v61_v45, 2102212464  ;;  %v76_v49 = vsel %vm68_vm3, %v55_v43, %v58_v44  ;;  %v80_v50 = vsel %vm68_vm3, %v58_v44, %v61_v45  ;;  %v77_v52 = vsel %vm71_vm4, %v64_v46, 920167782 }
  0x94   :  { %v81_v53 = vsel %vm71_vm4, %v67_v47, 1326507024  ;;  %v78_v54 = vsel %vm70_vm5, %v61_v45, %v77_v52  ;;  %v72_v57 = vsel %vm68_vm3, %v52_v51, %v55_v43  ;;  %v74_v58 = vsel %vm70_vm5, %v58_v44, %v73_v48 }
  0x95   :  { %v82_v55 = vsel %vm70_vm5, %v64_v46, %v81_v53  ;;  %v79_v59 = vsel %vm69_vm6, %v76_v49, %v78_v54  ;;  %v75_v1 = vsel %vm69_vm6, %v72_v57, %v74_v58 }
  0x96   :  { %v83_v60 = vsel %vm69_vm6, %v80_v50, %v82_v55  ;;  %v598_v63 = vmul.u32.u64.low %v84_v56, %v79_v59  ;;  %v599_v0 = vmul.u32.u64.high %v84_v56, %v79_v59, %v598_v63  ;;  %v91_v3 = vmul.u32 %v84_v56, %v75_v1 }
  0x97   :  { %v595_v61 = vmul.u32.u64.low %v84_v56, %v83_v60  ;;  %v596_v62 = vmul.u32.u64.high %v84_v56, %v83_v60, %v595_v61 }
  0x98   :  { %v94_v2 = vadd.s32 1, %v599_v0 }
  0x99   :  { %vm93_vm7 = vc.u32 %v596_v62, %v598_v63  ;;  %v92_v18 = vadd.s32 %v598_v63, %v596_v62 }
  0x9a   :  { %v95_v4 = vsel %vm93_vm7, %v94_v2, %v599_v0 }
  0x9b   :  { %v96_v5 = vadd.s32 %v95_v4, %v91_v3 }
  0x9d   :  { %v97_v6 = vadd.s32 536870912, %v96_v5 }
  0x9f   :  { %v98_v7 = vshrl.u32 %v97_v6, 30 }
  0xa1   :  { %v99_v8 = vshll.u32 %v98_v7, 30  ;;  %v122_v32 = vsub.s32 4, %v98_v7 }
  0xa3   :  { %v100_v9 = vsub.s32 %v96_v5, %v99_v8  ;;  %v123_v35 = vsel %vm38_vm9, %v122_v32, %v98_v7 }
  0xa4   :  { %v125_v36 = vsel %vm37_vm10, 0, %v123_v35 }
  0xa5   :  { %v102_v10 = vsub.s32 0, %v100_v9  ;;  %v232_v37 = vadd.s32 3, %v125_v36  ;;  %v129_v38 = vand.u32 3, %v125_v36 }
  0xa7   :  { %v418_v13 = vmin.u32 %v102_v10, %v100_v9  ;;  %v233_v39 = vand.u32 3, %v232_v37  ;;  %vm134_vm11 = vcmp.eq.s32.totalorder %v129_v38, 2  ;;  %vm131_vm13 = vcmp.eq.s32.totalorder %v129_v38, 0 }
  0xa8   :  { %vm130_vm15 = vcmp.lt.s32.totalorder %v129_v38, 2 }
  0xa9   :  { %v104_v14 = vclz %v418_v13  ;;  %vm238_vm12 = vcmp.eq.s32.totalorder %v233_v39, 2  ;;  %vm235_vm14 = vcmp.eq.s32.totalorder %v233_v39, 0  ;;  %vm234_vm1 = vcmp.lt.s32.totalorder %v233_v39, 2 }
  0xab   :  { %v419_v16 = vadd.s32 4294967294, %v104_v14 }
  0xad   :  { %vm420_vm8 = vcmp.lt.s32.totalorder %v419_v16, 0 }
  0xae   :  { %v107_v17 = vsel %vm420_vm8, 0, %v419_v16 }
  0xaf   :  { %v108_v19 = vsub.s32 32, %v107_v17  ;;  %v112_v21 = vsub.s32 4294967266, %v107_v17  ;;  %v109_v22 = vshll.u32 %v100_v9, %v107_v17 }
  0xb1   :  { %v110_v23 = vshrl.u32 %v92_v18, %v108_v19  ;;  %v113_v24 = vadd.s32 127, %v112_v21 }
  0xb3   :  { %v111_v25 = vor.u32 %v110_v23, %v109_v22  ;;  %v114_v26 = vshll.u32 %v113_v24, 23 }
  0xb5   :  { %v115_v27 = vor.u32 4788187, %v114_v26  ;;  %v118_v29 = vcvt.s32.f32 %v111_v25 }
  0xb7   :  { %v116_v28 = vand.u32 2147483647, %v115_v27 }
  0xb9   :  { %v119_v30 = vmul.f32 %v118_v29, %v116_v28 }
  0xbb   :  { %v120_v31 = vxor.u32 2147483648, %v119_v30 }
  0xbd   :  { %v121_v33 = vsel %vm38_vm9, %v120_v31, %v119_v30 }
  0xbe   :  { %v124_v34 = vsel %vm37_vm10, %v589_v15, %v121_v33 }
  0xbf   :  { %497 = vcosq.f32 %v124_v34 }
  0xc0   :  { %499 = vsinq.f32 %v124_v34 }
  0xcc   :  { %v498_v40 = vpop.eup %497 }
  0xcd   :  { %v500_v41 = vpop.eup %499  ;;  %v135_v42 = vxor.u32 2147483648, %v498_v40 }
  0xce   :  { %v132_v43 = vxor.u32 2147483648, %v500_v41 }
  0xcf   :  { %v136_v44 = vsel %vm134_vm11, %v135_v42, %v500_v41  ;;  %v240_v45 = vsel %vm238_vm12, %v135_v42, %v500_v41 }
  0xd0   :  { %v133_v20 = vsel %vm131_vm13, %v498_v40, %v132_v43  ;;  %v237_v46 = vsel %vm235_vm14, %v498_v40, %v132_v43 }
  0xd1   :  { %v137_v49 = vsel %vm130_vm15, %v133_v20, %v136_v44  ;;  %v241_v50 = vsel %vm234_vm1, %v237_v46, %v240_v45 }
  0xd2   :  { %v138_v51 = vsel %vm128_vm2, nan, %v137_v49  ;;  %v242_v52 = vsel %vm128_vm2, nan, %v241_v50 }
  0xd3   :  { %v323_v47 = vpop.f32.mrf.mxu0  ;;  %v396_v48 = vpop.f32.mrf.mxu1  ;;  %v400_v55 = vmul.f32 %v575_v11, %v138_v51  ;;  %v404_v57 = vmul.f32 %v580_v12, %v138_v51 }
  0xd4   :  { %v401_v56 = vmul.f32 %v323_v47, %v242_v52  ;;  %v405_v58 = vmul.f32 %v396_v48, %v242_v52 }
  0xd5   :  { %v463_v53 = vpop.f32.mrf.mxu0  ;;  %v482_v54 = vpop.f32.mrf.mxu1 }
  0xd6   :  { %v402_v59 = vadd.f32 %v401_v56, %v400_v55  ;;  %v406_v60 = vadd.f32 %v405_v58, %v404_v57 }
  0xd8   :  { %403 = vst.msk [vmem:[%s625_s5] sm:$0xff] %vm253_vm0, %v402_v59  ;;  %407 = vst.msk [vmem:[%s626_s6] sm:$0xff] %vm253_vm0, %v406_v60 }

</bundles_post_ra>
